<compile_context>
chip_gen: v5e
topology: v5e:2x2
jax: 0.10.0
libtpu: 0.0.40
codegen_flags: <defaults>
</compile_context>

<pallas_src>
import jax
import jax.numpy as jnp
from jax import lax
from jax.experimental import pallas as pl
from jax.experimental.pallas import tpu as pltpu


def _round_up(x, m):
    return (x + m - 1) // m * m


# ----------------------------------------------------------------------------
# Fused kernel.  Grid = (U inner models ["parallel"], node tiles ["arbitrary"]).
# Per grid step (u, n):
#   h_node = silu( [onehot(z) | pos] @ [E_u ; Wp_u]  +  bp_u )     (TN, Hp)
#   acc   += segment_sum(h_node, batch)                            (B,  Hp)
#   at the last node tile of model u:
#   out_u  = acc @ W_u^T      (this model's slice of cat(dim=1)+Linear, no bias)
# ----------------------------------------------------------------------------
def _fused_model3d_kernel(z_ref, pos_ref, batch_ref, waug_ref, bpos_ref,
                          lin_w_ref, out_ref, acc_ref):
    n = pl.program_id(1)
    last_n = pl.num_programs(1) - 1

    @pl.when(n == 0)
    def _():
        acc_ref[...] = jnp.zeros_like(acc_ref)

    z = z_ref[...]                       # (TN, 1) int32
    pos = pos_ref[...]                   # (TN, 3) bf16
    batch = batch_ref[...]               # (1, TN) int32

    tn = z.shape[0]
    vp = waug_ref.shape[0] - 3           # 128-aligned padded vocab width
    n_graphs = acc_ref.shape[0]

    # One-hot over the padded vocab (exact 0/1 in bf16).  z >= vocab silently
    # yields a zero row (surrogate semantics, noted deviation from F.embedding).
    vocab_iota = lax.broadcasted_iota(jnp.int32, (tn, vp), 1)
    onehot = (z == vocab_iota).astype(jnp.bfloat16)            # (TN, Vp)

    # Augmented MXU contraction: pos columns appended at the 128-aligned lane
    # offset Vp, so the concat is a cheap 3-lane insert and the pos projection
    # is free inside the already-padded contraction dim.
    aug = jnp.concatenate([onehot, pos], axis=-1)              # (TN, Vp+3) bf16
    h = jnp.dot(aug, waug_ref[...],
                preferred_element_type=jnp.float32)            # (TN, Hp) f32
    h = h + bpos_ref[...]                                      # (1, Hp) bcast

    # SiLU (sigmoid on the EUP slot, multiply on the VPU).
    h = h * jax.nn.sigmoid(h)

    # Segment-sum pooling over `batch` as a bf16 MXU matmul with f32
    # accumulation into the VMEM-resident per-model accumulator.  Padded
    # nodes carry batch id == n_graphs and therefore never match the mask.
    graph_iota = lax.broadcasted_iota(jnp.int32, (n_graphs, tn), 0)
    pool = (graph_iota == batch).astype(jnp.bfloat16)          # (B, TN)
    acc_ref[...] += jnp.dot(pool, h.astype(jnp.bfloat16),
                            preferred_element_type=jnp.float32)

    # --- finalize model u: its slice of Linear(H*U, out_dim), bias-free -----
    @pl.when(n == last_n)
    def _():
        emb = acc_ref[...]                                     # (B, Hp) f32
        w = lin_w_ref[...]                                     # (out, Hp) f32
        out_dim = w.shape[0]
        if out_dim == 1:
            # Row reduce on VPU/XLU; avoids a (B, out, H) broadcast temp.
            out_ref[...] = jnp.sum(emb * w, axis=-1, keepdims=True)
        else:
            out_ref[...] = lax.dot_general(
                emb, w, dimension_numbers=(((1,), (1,)), ((), ())),
                preferred_element_type=jnp.float32)


# ----------------------------------------------------------------------------
# Wrapper: mirror of Model3D.forward.  Stacks the U data objects / parameter
# sets (padding vocab/hidden to 128 lanes and nodes to the tile size) and runs
# a single fused pallas_call; only stack/pad/sum/squeeze glue stays in JAX.
# ----------------------------------------------------------------------------
def model3d_forward(batched_data, inner_params, lin_w, lin_b, n_graphs,
                    node_tile=None):
    num_models = len(batched_data)
    n_nodes = batched_data[0]["x"].shape[0]
    vocab, hidden = inner_params[0]["embed"].shape
    out_dim = lin_w.shape[1]

    hp = _round_up(hidden, 128)           # lane-aligned hidden
    vp = _round_up(vocab, 128)            # lane-aligned vocab (concat offset)
    vaug = vp + 3                         # augmented contraction dim

    # --- bounded, aligned node tiling (default 1024 for large graphs) -------
    if node_tile is None:
        tn = _round_up(n_nodes, 8) if n_nodes <= 1024 else 1024
    else:
        tn = node_tile
    n_pad = _round_up(n_nodes, tn)
    num_tiles = n_pad // tn
    if num_tiles > 1:
        assert tn % 128 == 0, "node_tile must be a multiple of 128 when tiling"
    else:
        assert tn % 8 == 0

    def pad_nodes(a, fill):
        pad = ((0, n_pad - a.shape[0]),) + ((0, 0),) * (a.ndim - 1)
        return jnp.pad(a, pad, constant_values=fill)

    # Node tensors (padded nodes: z=0, pos=0, batch=n_graphs -> masked out).
    z = jnp.stack([pad_nodes(d["x"][:, 0:1].astype(jnp.int32), 0)
                   for d in batched_data])                          # (U,Np,1)
    pos = jnp.stack([pad_nodes(d["pos"].astype(jnp.bfloat16), 0)
                     for d in batched_data])                        # (U,Np,3)
    batch = jnp.stack([pad_nodes(d["batch"].astype(jnp.int32),
                                 n_graphs).reshape(1, -1)
                       for d in batched_data])                      # (U,1,Np)

    # Per-model augmented weight [E ; Wp] pre-cast to bf16 (zero padding is
    # exact end-to-end); per-node bias stays f32 (added to the f32 acc of the
    # bf16 matmul).
    def make_waug(p):
        e = jnp.zeros((vp, hp), jnp.float32).at[:vocab, :hidden].set(p["embed"])
        w = jnp.zeros((3, hp), jnp.float32).at[:, :hidden].set(p["wpos"])
        return jnp.concatenate([e, w], axis=0).astype(jnp.bfloat16)

    waug = jnp.stack([make_waug(p) for p in inner_params])          # (U,Vaug,Hp)
    bpos = jnp.stack([jnp.zeros((1, hp), jnp.float32)
                      .at[:, :hidden].set(p["bpos"]) for p in inner_params])

    # Final Linear split per inner model: (U, out_dim, Hp), zero-padded rows.
    w_lin = lin_w.reshape(num_models, hidden, out_dim).transpose(0, 2, 1)
    w_lin = jnp.pad(w_lin, ((0, 0), (0, 0), (0, hp - hidden)))      # (U,out,Hp)

    # --- VMEM budget (double-buffered inputs + intermediates), with margin --
    lane = lambda x: _round_up(x, 128)
    sub = lambda x: _round_up(x, 8)
    tile_bytes = (2 * sub(tn) * lane(1) * 4          # z
                  + 2 * sub(tn) * lane(3) * 2        # pos (bf16)
                  + 2 * sub(1) * lane(tn) * 4        # batch
                  + 2 * sub(vaug) * lane(hp) * 2     # augmented weight (bf16)
                  + 2 * sub(1) * lane(hp) * 4        # bpos
                  + 2 * sub(out_dim) * lane(hp) * 4  # lin_w
                  + sub(n_graphs) * lane(out_dim) * 4     # out block
                  + sub(n_graphs) * lane(hp) * 4)         # acc scratch
    inter_bytes = (sub(tn) * lane(vaug) * 2          # [onehot|pos] operand
                   + 2 * sub(tn) * lane(hp) * 4      # h (+ temp)
                   + sub(n_graphs) * lane(tn) * 4)   # pool mask
    vmem_limit = int(min(120 * 2**20,
                         max(16 * 2**20, 2 * (tile_bytes + inter_bytes))))

    partials = pl.pallas_call(
        _fused_model3d_kernel,
        out_shape=jax.ShapeDtypeStruct((num_models, n_graphs, out_dim),
                                       jnp.float32),
        grid=(num_models, num_tiles),
        in_specs=[
            pl.BlockSpec((None, tn, 1), lambda u, n: (u, n, 0)),           # z
            pl.BlockSpec((None, tn, 3), lambda u, n: (u, n, 0)),           # pos
            pl.BlockSpec((None, 1, tn), lambda u, n: (u, 0, n)),           # batch
            pl.BlockSpec((None, vaug, hp), lambda u, n: (u, 0, 0)),        # [E;Wp]
            pl.BlockSpec((None, 1, hp), lambda u, n: (u, 0, 0)),           # bpos
            pl.BlockSpec((None, out_dim, hp), lambda u, n: (u, 0, 0)),     # lin W
        ],
        out_specs=pl.BlockSpec((None, n_graphs, out_dim),
                               lambda u, n: (u, 0, 0)),
        scratch_shapes=[pltpu.VMEM((n_graphs, hp), jnp.float32)],
        compiler_params=pltpu.CompilerParams(
            # u axis is independent per-model work -> "parallel" (uses the
            # second TensorCore on v7x); node axis is the reduction.
            dimension_semantics=("parallel", "arbitrary"),
            vmem_limit_bytes=vmem_limit),
    )(z, pos, batch, waug, bpos, w_lin)

    # cat(dim=1) + Linear  ==  sum_u emb_u @ W_u  + b  (bias added once here).
    out = jnp.sum(partials, axis=0) + lin_b.reshape(1, out_dim)
    # torch .squeeze(-1): only drops the last dim when out_dim == 1.
    return jnp.squeeze(out, axis=-1) if out_dim == 1 else out


if __name__ == "__main__":
    # Small, Model3D-consistent shapes.
    unique_variables = 1
    hidden_dim = 32
    out_dim = 1
    n_nodes = 16          # total nodes across all graphs in the batch
    n_graphs = 2          # graphs per batch (== output batch size)
    vocab = 8             # atom-type vocabulary for the embedding
    node_feat = 4         # width of data.x (only column 0 is used)

    key = jax.random.PRNGKey(0)
    k_x, k_pos, k_emb, k_w, k_b = jax.random.split(key, 5)

    # One "data" object per inner model (unique_variables == 1 here).
    x = jax.random.randint(k_x, (n_nodes, node_feat), 0, vocab, dtype=jnp.int32)
    pos = jax.random.normal(k_pos, (n_nodes, 3), dtype=jnp.float32)
    batch = jnp.repeat(jnp.arange(n_graphs, dtype=jnp.int32),
                       n_nodes // n_graphs)
    batched_data = [{"x": x, "pos": pos, "batch": batch}
                    for _ in range(unique_variables)]

    # Deterministic parameters for each inner surrogate model.
    inner_params = []
    for i in range(unique_variables):
        ke, kw, kb = jax.random.split(jax.random.fold_in(k_emb, i), 3)
        inner_params.append({
            "embed": 0.1 * jax.random.normal(ke, (vocab, hidden_dim), jnp.float32),
            "wpos":  0.1 * jax.random.normal(kw, (3, hidden_dim), jnp.float32),
            "bpos":  0.1 * jax.random.normal(kb, (1, hidden_dim), jnp.float32),
        })

    # Final Linear(hidden_dim * unique_variables, out_dim); stored as (K, out)
    # so forward computes x_cat @ lin_w + lin_b.
    lin_w = 0.1 * jax.random.normal(
        k_w, (hidden_dim * unique_variables, out_dim), jnp.float32)
    lin_b = 0.1 * jax.random.normal(k_b, (1, out_dim), jnp.float32)

    out = model3d_forward(batched_data, inner_params, lin_w, lin_b, n_graphs)
    out = jax.block_until_ready(out)
    assert out.shape == (n_graphs,), out.shape
    print("KERNEL_OK")
</pallas_src>

<mosaic_0001>
module attributes {stable_mosaic.version = 11 : i64} {
  func.func @_fused_model3d_kernel(%arg0: i32, %arg1: i32, %arg2: memref<1x16x1xi32, #tpu.memory_space<vmem>>, %arg3: memref<1x16x3xbf16, #tpu.memory_space<vmem>>, %arg4: memref<1x1x16xi32, #tpu.memory_space<vmem>>, %arg5: memref<1x131x128xbf16, #tpu.memory_space<vmem>>, %arg6: memref<1x1x128xf32, #tpu.memory_space<vmem>>, %arg7: memref<1x1x128xf32, #tpu.memory_space<vmem>>, %arg8: memref<1x2x1xf32, #tpu.memory_space<vmem>>, %arg9: memref<2x128xf32, #tpu.memory_space<vmem>>) attributes {dimension_semantics = [#tpu.dimension_semantics<parallel>, #tpu.dimension_semantics<arbitrary>], iteration_bounds = array<i64: 1, 1>, scalar_prefetch = 0 : i64, scratch_operands = 1 : i64, tpu.core_type = #tpu.core_type<tc>, window_params = [{transform_indices = @transform_0, window_bounds = array<i64: 1, 16, 1>}, {transform_indices = @transform_1, window_bounds = array<i64: 1, 16, 3>}, {transform_indices = @transform_2, window_bounds = array<i64: 1, 1, 16>}, {transform_indices = @transform_3, window_bounds = array<i64: 1, 131, 128>}, {transform_indices = @transform_4, window_bounds = array<i64: 1, 1, 128>}, {transform_indices = @transform_5, window_bounds = array<i64: 1, 1, 128>}, {transform_indices = @transform_6, window_bounds = array<i64: 1, 2, 1>}]} {
    %c0_i32 = arith.constant 0 : i32
    %0 = arith.cmpi eq, %arg1, %c0_i32 : i32
    %1 = arith.extui %0 : i1 to i32
    %c0_i32_0 = arith.constant 0 : i32
    %2 = arith.cmpi ne, %1, %c0_i32_0 : i32
    scf.if %2 {
      %cst_23 = arith.constant 0.000000e+00 : f32
      %43 = vector.broadcast %cst_23 : f32 to vector<2x128xf32>
      %c0_24 = arith.constant 0 : index
      %c0_25 = arith.constant 0 : index
      %44 = vector.load %arg9[%c0_24, %c0_25] : memref<2x128xf32, #tpu.memory_space<vmem>>, vector<2x128xf32>
      tpu.vector_store %arg9[%c0_24, %c0_25], %43 {strides = array<i32>} : memref<2x128xf32, #tpu.memory_space<vmem>>, vector<2x128xf32>,
    } else {
    }
    %c0 = arith.constant 0 : index
    %c0_1 = arith.constant 0 : index
    %c0_2 = arith.constant 0 : index
    %3 = vector.load %arg2[%c0, %c0_1, %c0_2] : memref<1x16x1xi32, #tpu.memory_space<vmem>>, vector<1x16x1xi32>
    %4 = vector.shape_cast %3 : vector<1x16x1xi32> to vector<16x1xi32>
    %c0_3 = arith.constant 0 : index
    %c0_4 = arith.constant 0 : index
    %c0_5 = arith.constant 0 : index
    %5 = vector.load %arg3[%c0_3, %c0_4, %c0_5] : memref<1x16x3xbf16, #tpu.memory_space<vmem>>, vector<1x16x3xbf16>
    %6 = vector.shape_cast %5 : vector<1x16x3xbf16> to vector<16x3xbf16>
    %c0_6 = arith.constant 0 : index
    %c0_7 = arith.constant 0 : index
    %c0_8 = arith.constant 0 : index
    %7 = vector.load %arg4[%c0_6, %c0_7, %c0_8] : memref<1x1x16xi32, #tpu.memory_space<vmem>>, vector<1x1x16xi32>
    %8 = vector.shape_cast %7 : vector<1x1x16xi32> to vector<1x16xi32>
    %9 = tpu.iota {dimensions = array<i32: 1>} : vector<16x128xi32>
    %10 = vector.broadcast %4 : vector<16x1xi32> to vector<16x128xi32>
    %11 = arith.cmpi eq, %10, %9 : vector<16x128xi32>
    %12 = arith.extui %11 : vector<16x128xi1> to vector<16x128xi32>
    %13 = arith.sitofp %12 : vector<16x128xi32> to vector<16x128xf32>
    %14 = arith.truncf %13 : vector<16x128xf32> to vector<16x128xbf16>
    %15 = tpu.concatenate %14, %6 in 1 : vector<16x128xbf16>, vector<16x3xbf16> -> vector<16x131xbf16>
    %c0_9 = arith.constant 0 : index
    %c0_10 = arith.constant 0 : index
    %c0_11 = arith.constant 0 : index
    %16 = vector.load %arg5[%c0_9, %c0_10, %c0_11] : memref<1x131x128xbf16, #tpu.memory_space<vmem>>, vector<1x131x128xbf16>
    %17 = vector.shape_cast %16 : vector<1x131x128xbf16> to vector<131x128xbf16>
    %cst = arith.constant dense<0.000000e+00> : vector<16x128xf32>
    %18 = tpu.matmul %15, %17, %cst {dimension_numbers = #tpu.dot_dimension_numbers<[1], [0], [0], [1], [0, 0, 1, 1], [], []>} : vector<16x131xbf16>, vector<131x128xbf16>, vector<16x128xf32> -> vector<16x128xf32>
    %c0_12 = arith.constant 0 : index
    %c0_13 = arith.constant 0 : index
    %c0_14 = arith.constant 0 : index
    %19 = vector.load %arg6[%c0_12, %c0_13, %c0_14] : memref<1x1x128xf32, #tpu.memory_space<vmem>>, vector<1x1x128xf32>
    %20 = vector.shape_cast %19 : vector<1x1x128xf32> to vector<1x128xf32>
    %21 = vector.broadcast %20 : vector<1x128xf32> to vector<16x128xf32>
    %22 = arith.addf %18, %21 : vector<16x128xf32>
    %23 = arith.negf %22 : vector<16x128xf32>
    %24 = math.exp %23 : vector<16x128xf32>
    %cst_15 = arith.constant 1.000000e+00 : f32
    %25 = vector.broadcast %cst_15 : f32 to vector<16x128xf32>
    %26 = arith.addf %25, %24 : vector<16x128xf32>
    %27 = arith.divf %25, %26 : vector<16x128xf32>
    %28 = arith.mulf %22, %27 : vector<16x128xf32>
    %29 = tpu.iota {dimensions = array<i32: 0>} : vector<2x16xi32>
    %30 = vector.broadcast %8 : vector<1x16xi32> to vector<2x16xi32>
    %31 = arith.cmpi eq, %29, %30 : vector<2x16xi32>
    %32 = arith.extui %31 : vector<2x16xi1> to vector<2x16xi32>
    %33 = arith.sitofp %32 : vector<2x16xi32> to vector<2x16xf32>
    %34 = arith.truncf %33 : vector<2x16xf32> to vector<2x16xbf16>
    %c0_16 = arith.constant 0 : index
    %c0_17 = arith.constant 0 : index
    %35 = vector.load %arg9[%c0_16, %c0_17] : memref<2x128xf32, #tpu.memory_space<vmem>>, vector<2x128xf32>
    %36 = arith.truncf %28 : vector<16x128xf32> to vector<16x128xbf16>
    %cst_18 = arith.constant dense<0.000000e+00> : vector<2x128xf32>
    %37 = tpu.matmul %34, %36, %cst_18 {dimension_numbers = #tpu.dot_dimension_numbers<[1], [0], [0], [1], [0, 0, 1, 1], [], []>} : vector<2x16xbf16>, vector<16x128xbf16>, vector<2x128xf32> -> vector<2x128xf32>
    %38 = arith.addf %35, %37 : vector<2x128xf32>
    %c0_19 = arith.constant 0 : index
    %c0_20 = arith.constant 0 : index
    %39 = vector.load %arg9[%c0_19, %c0_20] : memref<2x128xf32, #tpu.memory_space<vmem>>, vector<2x128xf32>
    tpu.vector_store %arg9[%c0_19, %c0_20], %38 {strides = array<i32>} : memref<2x128xf32, #tpu.memory_space<vmem>>, vector<2x128xf32>,
    %c0_i32_21 = arith.constant 0 : i32
    %40 = arith.cmpi eq, %arg1, %c0_i32_21 : i32
    %41 = arith.extui %40 : i1 to i32
    %c0_i32_22 = arith.constant 0 : i32
    %42 = arith.cmpi ne, %41, %c0_i32_22 : i32
    scf.if %42 {
      %c0_23 = arith.constant 0 : index
      %c0_24 = arith.constant 0 : index
      %43 = vector.load %arg9[%c0_23, %c0_24] : memref<2x128xf32, #tpu.memory_space<vmem>>, vector<2x128xf32>
      %c0_25 = arith.constant 0 : index
      %c0_26 = arith.constant 0 : index
      %c0_27 = arith.constant 0 : index
      %44 = vector.load %arg7[%c0_25, %c0_26, %c0_27] : memref<1x1x128xf32, #tpu.memory_space<vmem>>, vector<1x1x128xf32>
      %45 = vector.shape_cast %44 : vector<1x1x128xf32> to vector<1x128xf32>
      %46 = vector.broadcast %45 : vector<1x128xf32> to vector<2x128xf32>
      %47 = arith.mulf %43, %46 : vector<2x128xf32>
      %cst_28 = arith.constant dense<0.000000e+00> : vector<2xf32>
      %48 = vector.multi_reduction <add>, %47, %cst_28 [1] : vector<2x128xf32> to vector<2xf32>
      %49 = vector.shape_cast %48 : vector<2xf32> to vector<2x1xf32>
      %c0_29 = arith.constant 0 : index
      %c0_30 = arith.constant 0 : index
      %c0_31 = arith.constant 0 : index
      %50 = vector.load %arg8[%c0_29, %c0_30, %c0_31] : memref<1x2x1xf32, #tpu.memory_space<vmem>>, vector<1x2x1xf32>
      %51 = vector.shape_cast %50 : vector<1x2x1xf32> to vector<2x1xf32>
      %52 = vector.shape_cast %49 : vector<2x1xf32> to vector<1x2x1xf32>
      tpu.vector_store %arg8[%c0_29, %c0_30, %c0_31], %52 {strides = array<i32>} : memref<1x2x1xf32, #tpu.memory_space<vmem>>, vector<1x2x1xf32>,
    } else {
    }
    return
  }
  func.func @transform_0(%arg0: i32, %arg1: i32) -> (i32, i32, i32) {
    %c0_i32 = arith.constant 0 : i32
    %c0_i32_0 = arith.constant 0 : i32
    return %arg0, %arg1, %c0_i32 : i32, i32, i32
  }
  func.func @transform_1(%arg0: i32, %arg1: i32) -> (i32, i32, i32) {
    %c0_i32 = arith.constant 0 : i32
    %c0_i32_0 = arith.constant 0 : i32
    return %arg0, %arg1, %c0_i32 : i32, i32, i32
  }
  func.func @transform_2(%arg0: i32, %arg1: i32) -> (i32, i32, i32) {
    %c0_i32 = arith.constant 0 : i32
    %c0_i32_0 = arith.constant 0 : i32
    return %arg0, %c0_i32, %arg1 : i32, i32, i32
  }
  func.func @transform_3(%arg0: i32, %arg1: i32) -> (i32, i32, i32) {
    %c0_i32 = arith.constant 0 : i32
    %c0_i32_0 = arith.constant 0 : i32
    %c0_i32_1 = arith.constant 0 : i32
    return %arg0, %c0_i32, %c0_i32_0 : i32, i32, i32
  }
  func.func @transform_4(%arg0: i32, %arg1: i32) -> (i32, i32, i32) {
    %c0_i32 = arith.constant 0 : i32
    %c0_i32_0 = arith.constant 0 : i32
    %c0_i32_1 = arith.constant 0 : i32
    return %arg0, %c0_i32, %c0_i32_0 : i32, i32, i32
  }
  func.func @transform_5(%arg0: i32, %arg1: i32) -> (i32, i32, i32) {
    %c0_i32 = arith.constant 0 : i32
    %c0_i32_0 = arith.constant 0 : i32
    %c0_i32_1 = arith.constant 0 : i32
    return %arg0, %c0_i32, %c0_i32_0 : i32, i32, i32
  }
  func.func @transform_6(%arg0: i32, %arg1: i32) -> (i32, i32, i32) {
    %c0_i32 = arith.constant 0 : i32
    %c0_i32_0 = arith.constant 0 : i32
    %c0_i32_1 = arith.constant 0 : i32
    return %arg0, %c0_i32, %c0_i32_0 : i32, i32, i32
  }
}

</mosaic_0001>

<bundles_post_ra>
// kernel: tpu_custom_call.1
= control target key start
LH: loop header
LB: loop body
LE: loop exit
PB: predicated region body
PF: predicated region fallthrough
CT: control target
= control target key end

     0   :  { %11 = vsyncpa [#allocation4], 0  ;;  %s371_s24 = smov [#allocation3]   ;;  %s372_s26 = smov 64   ;;  %s442_s0 = inlined_call_operand.vmem [shape: s32[1,16,1], index: 0, kind: input, shape index: {}]   ;;  %s443_s1 = inlined_call_operand.vmem [shape: bf16[1,16,3], index: 1, kind: input, shape index: {}]   ;;  %s444_s2 = inlined_call_operand.vmem [shape: s32[1,1,16], index: 2, kind: input, shape index: {}]   ;;  %s445_s3 = inlined_call_operand.hbm [shape: bf16[1,131,128], index: 3, kind: input, shape index: {}]   ;;  %s446_s4 = inlined_call_operand.vmem [shape: f32[1,1,128], index: 4, kind: input, shape index: {}]   ;;  %s447_s5 = inlined_call_operand.vmem [shape: f32[1,1,128], index: 5, kind: input, shape index: {}]   ;;  %s448_s6 = inlined_call_operand.vmem [shape: f32[1,2,1], index: 6, kind: output, shape index: {}]  }
   0x1   :  { %s22_s23 = sshll.u32 %s445_s3, 4  ;;  %s24_s25 = sshll.u32 %s371_s24, 4  ;;  %s23_s23 = int_to_ptr.hbm [resolvable:$true] %s22_s23  ;;  %s25_s25 = int_to_ptr.vmem [resolvable:$true] %s24_s25 }
   0x2   :  { %s373_s27 = smov 4  }
   0x3   :  { %30 = dma.hbm_to_vmem [thread:$0]  %s23_s23, 1088, %s25_s25, [#allocation4], %s372_s26, %s372_s26, %s373_s27  }
   0x4   :  { %369 = dma.done.wait [#allocation4], 1088  }
   0x5   :  { %370 = vsyncadd [#allocation4], 4294966208  ;;  %v374_v0 = vmov 0   ;;  %v375_v1 = vmov 0.0   ;;  %v45_v2 = vld [vmem:[%s442_s0] sm:$0xff]  ;;  %v325_v4 = vld [vmem:[#allocation3 + $0x30] sm:$0xff]  ;;  %v50_v20 = vlaneseq }
   0x6   :  { %333 = vset.pattern.permute.xlu0 %v374_v0  ;;  %44 = vst [vmem:[#allocation2] sm:$0x3] %v375_v1  ;;  %v326_v3 = vld [vmem:[#allocation3 + $0x38] sm:$0xff]  ;;  %v46_v5 = vld [vmem:[%s442_s0 + $0x8] sm:$0xff]  ;;  %v93_v9 = vld [vmem:[#allocation3 + $0x40] sm:$0x3] }
   0x7   :  { %53 = vperm.xlu0 %333, %v45_v2   ;;  %160 = vmatpush.bf16.msra.mxu0 %v326_v3  ;;  %v324_v6 = vld [vmem:[#allocation3 + $0x28] sm:$0xff]  ;;  %v323_v7 = vld [vmem:[#allocation3 + $0x20] sm:$0xff]  ;;  %v322_v8 = vld [vmem:[#allocation3 + $0x18] sm:$0xff]  ;;  %v131_v10 = vunpack.c.l.b16 %v93_v9  ;;  %vm153_vm0 = vcmask 1040384   ;;  %vm154_vm1 = vcmask 1041408   ;;  %v376_v13 = vmov 65535  }
   0x8   :  { %v321_v11 = vld [vmem:[#allocation3 + $0x10] sm:$0xff]  ;;  %v155_v14 = vsel %vm153_vm0, 4294967295, %v376_v13  ;;  %v320_v17 = vld [vmem:[#allocation3 + $0x8] sm:$0xff]  ;;  %v318_v18 = vld [vmem:[%s443_s1] sm:$0xff]  ;;  %vm149_vm2 = vcmask 23552   ;;  %v51_v21 = vand.u32 127, %v50_v20 }
   0x9   :  { %v140_v12 = vpack.c.b16 %v131_v10, %v131_v10  ;;  %v156_v15 = vsel %vm154_vm1, %v155_v14, 0  ;;  %v319_v19 = vld [vmem:[#allocation3] sm:$0xff]  ;;  %v334_v31 = vld [vmem:[%s446_s4] ss:$0 sm:$0xff]  ;;  %v229_v56 = vshrl.u32 %v50_v20, 7  ;;  %vm237_vm14 = vcmask 130048  }
   0xa   :  { %v335_v58 = vld [vmem:[%s444_s2] ss:$0 sm:$0xff]  ;;  %vm268_vm15 = vcmask 1024  }
   0xb   :  { %161 = vmatpush.bf16.msra.mxu0 %v325_v4  ;;  %v158_v16 = vand.u32 %v156_v15, %v140_v12  ;;  %vm231_vm12 = vcmp.eq.s32.totalorder %v229_v56, %v335_v58  ;;  %v336_v13 = vld [vmem:[%s447_s5] ss:$0 sm:$0xff] }
   0xd   :  { %181 = vmatpush.bf16.msra.mxu1 %v158_v16  ;;  %v235_v10 = vld [vmem:[#allocation2] sm:$0x3] }
   0xf   :  { %56 = vperm.xlu0 %333, %v46_v5   ;;  %162 = vmatpush.bf16.msra.mxu0 %v324_v6 }
  0x10   :  { %313 = vmatmul.msk.bf16.vlgmr.msra.gmra.mxu1 %vm149_vm2, %v318_v18 }
  0x13   :  { %163 = vmatpush.bf16.msra.mxu0 %v323_v7  ;;  %v316_v7 = vsel %vm231_vm12, 1.0, %v375_v1 }
  0x14   :  { %v234_v9 = vpack.c.bf16 %v316_v7, %v316_v7 }
  0x17   :  { %164 = vmatpush.bf16.msra.mxu0 %v322_v8 }
  0x1b   :  { %165 = vmatpush.bf16.msra.mxu0 %v321_v11 }
  0x1f   :  { %166 = vmatpush.bf16.msra.mxu0 %v320_v17 }
  0x23   :  { %167 = vmatpush.bf16.msra.mxu0 %v319_v19 }
  0x79   :  { %v54_v22 = vpop.permute.xlu0 %53 }
  0x7a   :  { %vm58_vm3 = vcmp.eq.s32.totalorder %v54_v22, %v51_v21 }
  0x7b   :  { %v275_v23 = vsel %vm58_vm3, 1.0, %v375_v1 }
  0x7c   :  { %v64_v25 = vpack.c.bf16 %v275_v23, %v275_v23 }
  0x7e   :  { %v68_v28 = vunpack.c.l.b16 %v64_v25 }
  0x81   :  { %v57_v24 = vpop.permute.xlu0 %56 }
  0x82   :  { %vm59_vm4 = vcmp.eq.s32.totalorder %v57_v24, %v51_v21 }
  0x83   :  { %v276_v26 = vsel %vm59_vm4, 1.0, %v375_v1 }
  0x84   :  { %v65_v27 = vpack.c.bf16 %v276_v26, %v276_v26 }
  0x86   :  { %v69_v29 = vunpack.c.l.b16 %v65_v27 }
  0x88   :  { %v70_v30 = vpack.c.b16 %v69_v29, %v68_v28 }
  0x8a   :  { %168 = vmatmul.bf16.vlgmr.msra.gmra.mxu0 %v70_v30 }
  0x8d   :  { %v183_v32 = vpop.f32.mrf.mxu1 }
  0x95   :  { %v185_v39 = vpop.f32.mrf.mxu1 }
 0x107   :  { %v169_v33 = vpop.f32.mrf.mxu0 }
 0x108   :  { %v170_v34 = vadd.f32 %v334_v31, %v169_v33 }
 0x10a   :  { %v184_v35 = vadd.f32 %v183_v32, %v170_v34 }
 0x10c   :  { %v314_v36 = vmul.f32 -1.442695, %v184_v35 }
 0x10e   :  { %337 = vpow2.f32 %v314_v36 }
 0x10f   :  { %v171_v37 = vpop.f32.mrf.mxu0 }
 0x110   :  { %v172_v38 = vadd.f32 %v334_v31, %v171_v37 }
 0x112   :  { %v186_v40 = vadd.f32 %v185_v39, %v172_v38 }
 0x114   :  { %v338_v41 = vpop.eup %337  ;;  %v315_v42 = vmul.f32 -1.442695, %v186_v40 }
 0x115   :  { %v194_v43 = vadd.f32 1.0, %v338_v41 }
 0x116   :  { %339 = vpow2.f32 %v315_v42 }
 0x117   :  { %341 = vrcp.f32 %v194_v43  ;;  %v207_v53 = vand.u32 2147483648, %v194_v43  ;;  %vm201_vm6 = vweird.f32 %v194_v43  ;;  %v205_v54 = vand.u32 2147483647, %v194_v43 }
 0x119   :  { %v208_v62 = vor.u32 1.1754944e-38, %v207_v53  ;;  %vm206_vm9 = vcmp.eq.f32.partialorder %v205_v54, 8.507059e+37 }
 0x11c   :  { %v340_v44 = vpop.eup %339 }
 0x11d   :  { %v342_v45 = vpop.eup %341  ;;  %v195_v46 = vadd.f32 1.0, %v340_v44 }
 0x11e   :  { %v197_v47 = vmul.f32 %v342_v45, %v194_v43  ;;  %vm202_vm5 = vweird.f32 %v342_v45 }
 0x11f   :  { %343 = vrcp.f32 %v195_v46  ;;  %vm203_vm7 = vmor %vm201_vm6, %vm202_vm5  ;;  %v222_v57 = vand.u32 2147483648, %v195_v46  ;;  %v220_v61 = vand.u32 2147483647, %v195_v46  ;;  %vm216_vm10 = vweird.f32 %v195_v46 }
 0x120   :  { %v198_v48 = vsub.f32 1.0, %v197_v47 }
 0x121   :  { %v223_v2 = vor.u32 1.1754944e-38, %v222_v57  ;;  %vm221_vm13 = vcmp.eq.f32.partialorder %v220_v61, 8.507059e+37 }
 0x122   :  { %v199_v49 = vmul.f32 %v342_v45, %v198_v48 }
 0x124   :  { %v200_v51 = vadd.f32 %v342_v45, %v199_v49 }
 0x125   :  { %v344_v50 = vpop.eup %343 }
 0x126   :  { %v212_v52 = vmul.f32 %v344_v50, %v195_v46  ;;  %v204_v59 = vsel %vm203_vm7, %v342_v45, %v200_v51  ;;  %vm217_vm8 = vweird.f32 %v344_v50 }
 0x127   :  { %v209_v0 = vsel %vm206_vm9, %v208_v62, %v204_v59  ;;  %vm218_vm11 = vmor %vm216_vm10, %vm217_vm8 }
 0x128   :  { %v213_v55 = vsub.f32 1.0, %v212_v52  ;;  %v226_v5 = vmul.f32 %v209_v0, %v184_v35 }
 0x12a   :  { %v214_v60 = vmul.f32 %v344_v50, %v213_v55 }
 0x12c   :  { %v215_v63 = vadd.f32 %v344_v50, %v214_v60 }
 0x12e   :  { %v219_v3 = vsel %vm218_vm11, %v344_v50, %v215_v63 }
 0x12f   :  { %v224_v4 = vsel %vm221_vm13, %v223_v2, %v219_v3 }
 0x130   :  { %v227_v6 = vmul.f32 %v224_v4, %v186_v40 }
 0x132   :  { %v236_v8 = vpack.c.bf16 %v227_v6, %v226_v5 }
 0x134   :  { %248 = vmatpush.bf16.msra.mxu2 %v236_v8 }
 0x137   :  { %317 = vmatmul.msk.bf16.vlgmr.msra.gmra.mxu2 %vm237_vm14, %v234_v9 }
 0x1ba   :  { %v250_v11 = vpop.f32.mrf.mxu2 }
 0x1bb   :  { %v254_v12 = vadd.f32 %v250_v11, %v235_v10 }
 0x1bd   :  { %255 = vst [vmem:[#allocation2] sm:$0x3] %v254_v12 }
 0x1c2   :  { %v252_v14 = vpop.f32.mrf.mxu2 }
 0x1c4   :  { %v259_v15 = vld [vmem:[#allocation2] sm:$0x3] }
 0x1c5   :  { %v264_v16 = vmul.f32 %v336_v13, %v259_v15 }
 0x1c7   :  { %v265_v17 = vsel %vm154_vm1, %v264_v16, 0.0 }
 0x1c8   :  { %266 = vadd.xlane.f32.xlu1 %v265_v17 }
 0x23b   :  { %v267_v1 = vpop.xlane.xlu1 %266 }
 0x23c   :  { %269 = vst.msk [vmem:[%s448_s6] sm:$0x3] %vm268_vm15, %v267_v1 }
 0x23d   :  { %274 = vsyncpa [#allocation4], 1 }

</bundles_post_ra>
